<compile_context>
chip_gen: v7x
topology: tpu7x:2x2x1
jax: 0.10.0
libtpu: 0.0.40
codegen_flags: <defaults>
</compile_context>

<pallas_src>
import functools

import jax
import jax.numpy as jnp
from jax.experimental import pallas as pl
from jax.experimental.pallas import tpu as pltpu


def _ce_kernel(logits_ref, tgt_ref, sum_ref, cnt_ref, sum_acc, cnt_acc, *, pad_idx):
    t = pl.program_id(1)  # tile index within this chunk

    @pl.when(t == 0)
    def _():
        sum_acc[...] = jnp.zeros_like(sum_acc)
        cnt_acc[...] = jnp.zeros_like(cnt_acc)

    xr = logits_ref[...]                                      # (tm, V) input dtype
    tgt = tgt_ref[...]                                        # (tm, 1) int32

    # Row max and target-logit pick directly on the input dtype (both exact even in
    # bf16: max is compares only; the one-hot sum has a single nonzero term).  For
    # bf16 inputs this halves the VALU slot cost of these passes (packed vregs).
    col = jax.lax.broadcasted_iota(jnp.int32, xr.shape, 1)
    onehot = col == tgt                                       # (tm, V) bool
    m_r = jnp.max(xr, axis=-1, keepdims=True)                 # (tm, 1)
    zero = jnp.array(0, dtype=xr.dtype)
    tgt_r = jnp.sum(jnp.where(onehot, xr, zero),
                    axis=-1, keepdims=True)                   # (tm, 1)
    # TODO(synk): on v7x, hoisting `col` into a persistent VMEM scratch (filled once at
    # t==0) trades a VALU op/element for a vld; skipped here to preserve VMEM headroom.

    # f32 compute for exp/log (mandatory on v5e: no bf16 VPU/EUP).
    m = m_r.astype(jnp.float32)                               # (tm, 1)
    xs = xr.astype(jnp.float32) - m                           # (tm, V)
    sumexp = jnp.sum(jnp.exp(xs), axis=-1, keepdims=True)     # (tm, 1)
    # loss = LSE - tgt_logit = (log(sumexp) + m) - tgt_logit
    loss = jnp.log(sumexp) + (m - tgt_r.astype(jnp.float32))  # (tm, 1)
    # TODO(synk): if v7x profiling shows the single f32-exp EUP slot binding, evaluate
    # exp in bf16 with f32 accumulation (accuracy tradeoff; validate vs _reference).

    # ignore_index mask.  Tail / phantom rows carry tgt == pad_idx and possibly garbage
    # logits from a partial DMA; `where` (not a multiply) guarantees NaN/inf can't leak.
    valid = tgt != pad_idx                                    # (tm, 1) bool
    sum_acc[...] += jnp.where(valid, loss, 0.0)
    cnt_acc[...] += valid.astype(jnp.float32)

    # Deferred cross-lane reduce + scalar store, once per chunk.
    @pl.when(t == pl.num_programs(1) - 1)
    def _():
        sum_ref[...] = jnp.sum(sum_acc[...]).reshape(1, 1, 1)
        cnt_ref[...] = jnp.sum(cnt_acc[...]).reshape(1, 1, 1)


def _round_up(x, m):
    return ((x + m - 1) // m) * m


def _device_kind():
    try:
        return jax.devices()[0].device_kind.lower()
    except Exception:
        return ""


def _vmem_capacity_bytes():
    try:
        cap = getattr(pltpu.get_tpu_info(), "vmem_capacity_bytes", None)
        if cap:
            return int(cap)
    except Exception:
        pass
    kind = _device_kind()
    return (64 << 20) if ("v7" in kind or "7x" in kind) else (128 << 20)


def _default_num_chunks():
    # The leading "parallel" chunk axis only pays off on v7x (2 TensorCores/chip);
    # on 1-TC chips it can only add a wasted phantom tile, so default to 1 there.
    kind = _device_kind()
    return 2 if ("v7" in kind or "7x" in kind) else 1


def criterion_forward(outputs, targets, pad_idx, *,
                      block_bytes=None, max_tm=2048, num_chunks=None,
                      vmem_limit_bytes=None):
    """Equivalent of Criterion.forward: masked-mean cross-entropy.

    outputs: (..., V) float logits.  Supply bf16 produced upstream when possible (the
             kernel is HBM-streaming bound and casts internally); do not cast f32->bf16
             in a wrapper, that adds its own HBM round trip.
    targets: (...,) int class ids; values equal to pad_idx are ignored.  Out-of-range
             ids that are not pad_idx are not checked (loss degrades to the full LSE).
    All-pad input yields 0/0 = NaN (matches torch mean-of-empty semantics).
    """
    vocab_size = outputs.shape[-1]
    logits = outputs.reshape(-1, vocab_size)                  # (N, V), not copied/padded
    tgts = targets.reshape(-1, 1).astype(jnp.int32)           # (N, 1)
    n_rows = logits.shape[0]

    # Generation-aware defaults.
    vmem_cap = _vmem_capacity_bytes()
    big_vmem = vmem_cap >= (100 << 20)                        # v5e / v6e (128 MiB)
    if block_bytes is None:
        block_bytes = (8 << 20) if big_vmem else (4 << 20)    # v7x: 64 MiB / TC
    if vmem_limit_bytes is None:
        vmem_limit_bytes = (96 << 20) if big_vmem else (44 << 20)
    if num_chunks is None:
        num_chunks = _default_num_chunks()

    # ---- row tile: ~block_bytes of logits per block, multiple of 8, capped. ----
    itemsize = jnp.dtype(logits.dtype).itemsize
    bytes_per_row = max(vocab_size * itemsize, 1)
    tm = block_bytes // bytes_per_row
    tm = max(8, min(int(max_tm), (int(tm) // 8) * 8))
    tm = min(tm, _round_up(n_rows, 8))

    n_tiles = pl.cdiv(n_rows, tm)
    num_chunks = max(1, min(int(num_chunks), n_tiles))
    tiles_per_chunk = pl.cdiv(n_tiles, num_chunks)
    padded_rows = num_chunks * tiles_per_chunk * tm

    # Pad ONLY the tiny targets array (pad rows -> pad_idx -> zero contribution).
    pad = padded_rows - n_rows
    if pad:
        tgts = jnp.pad(tgts, ((0, pad), (0, 0)), constant_values=pad_idx)

    def logits_map(c, t):
        # Clamp phantom tiles (chunk rounding) onto the last real tile so the DMA is
        # never fully out of bounds; their targets are pad_idx so they contribute 0.
        return (jnp.minimum(c * tiles_per_chunk + t, n_tiles - 1), 0)

    def tgt_map(c, t):
        return (c * tiles_per_chunk + t, 0)

    kernel = functools.partial(_ce_kernel, pad_idx=pad_idx)

    sum_out, cnt_out = pl.pallas_call(
        kernel,
        out_shape=(
            jax.ShapeDtypeStruct((num_chunks, 1, 1), jnp.float32),
            jax.ShapeDtypeStruct((num_chunks, 1, 1), jnp.float32),
        ),
        grid_spec=pltpu.PrefetchScalarGridSpec(
            num_scalar_prefetch=0,
            grid=(num_chunks, tiles_per_chunk),
            in_specs=[
                # NOTE: pipeline_mode=pl.Buffered(3) on this spec is an option on v5e if
                # profiling shows exposed DMA at tile switch; kept at default 2 for VMEM.
                pl.BlockSpec((tm, vocab_size), logits_map),
                pl.BlockSpec((tm, 1), tgt_map),
            ],
            out_specs=[
                pl.BlockSpec((1, 1, 1), lambda c, t: (c, 0, 0)),
                pl.BlockSpec((1, 1, 1), lambda c, t: (c, 0, 0)),
            ],
            scratch_shapes=[
                pltpu.VMEM((tm, 1), jnp.float32),   # per-row loss partials
                pltpu.VMEM((tm, 1), jnp.float32),   # per-row count partials
            ],
        ),
        compiler_params=pltpu.CompilerParams(
            dimension_semantics=("parallel", "arbitrary"),
            vmem_limit_bytes=int(vmem_limit_bytes),
        ),
    )(logits, tgts)

    # mean over non-pad positions (NaN if all positions are pad, matching torch).
    return jnp.sum(sum_out) / jnp.sum(cnt_out)


def _reference(outputs, targets, pad_idx):
    vocab_size = outputs.shape[-1]
    logits = outputs.reshape(-1, vocab_size).astype(jnp.float32)
    tgts = targets.reshape(-1)
    lse = jax.scipy.special.logsumexp(logits, axis=-1)
    tgt_logit = jnp.take_along_axis(logits, tgts[:, None], axis=-1)[:, 0]
    loss = lse - tgt_logit
    mask = (tgts != pad_idx).astype(jnp.float32)
    return jnp.sum(loss * mask) / jnp.sum(mask)


if __name__ == "__main__":
    key = jax.random.PRNGKey(0)
    k1, k2, k3, k4, k5, k6 = jax.random.split(key, 6)

    pad_idx = 0
    batch, seq, vocab = 2, 8, 32

    # 1) f32 logits, row count divisible by the tile.
    outputs = jax.random.normal(k1, (batch, seq, vocab), dtype=jnp.float32)
    targets = jax.random.randint(k2, (batch, seq), 0, vocab, dtype=jnp.int32)
    loss = jax.block_until_ready(criterion_forward(outputs, targets, pad_idx))
    ref = _reference(outputs, targets, pad_idx)
    assert jnp.allclose(loss, ref, rtol=1e-5, atol=1e-5), (loss, ref)

    # 2) Non-divisible row count: exercises the partial (OOB-read) tail tile with
    #    unpadded logits.
    outputs2 = jax.random.normal(k3, (3, 7, vocab), dtype=jnp.float32)
    targets2 = jax.random.randint(k4, (3, 7), 0, vocab, dtype=jnp.int32)
    loss2 = jax.block_until_ready(criterion_forward(outputs2, targets2, pad_idx))
    ref2 = _reference(outputs2, targets2, pad_idx)
    assert jnp.allclose(loss2, ref2, rtol=1e-5, atol=1e-5), (loss2, ref2)

    # 3) bf16 logits + forced 2-chunk grid with an odd tile count: exercises the bf16
    #    max/one-hot path, the clamped phantom tile, and the per-chunk outputs
    #    (the v7x-shaped grid, runnable on any chip).
    outputs3 = jax.random.normal(k5, (4, 5, vocab), dtype=jnp.float32).astype(jnp.bfloat16)
    targets3 = jax.random.randint(k6, (4, 5), 0, vocab, dtype=jnp.int32)
    loss3 = jax.block_until_ready(
        criterion_forward(outputs3, targets3, pad_idx, max_tm=8, num_chunks=2))
    ref3 = _reference(outputs3, targets3, pad_idx)
    assert jnp.allclose(loss3, ref3, rtol=2e-3, atol=2e-3), (loss3, ref3)

    print("KERNEL_OK")
</pallas_src>

<mosaic_0001>
module attributes {stable_mosaic.version = 11 : i64} {
  func.func @_ce_kernel(%arg0: i32, %arg1: i32, %arg2: memref<16x32xf32, #tpu.memory_space<vmem>>, %arg3: memref<16x1xi32, #tpu.memory_space<vmem>>, %arg4: memref<1x1x1xf32, #tpu.memory_space<vmem>>, %arg5: memref<1x1x1xf32, #tpu.memory_space<vmem>>, %arg6: memref<16x1xf32, #tpu.memory_space<vmem>>, %arg7: memref<16x1xf32, #tpu.memory_space<vmem>>) attributes {dimension_semantics = [#tpu.dimension_semantics<parallel>, #tpu.dimension_semantics<arbitrary>], iteration_bounds = array<i64: 1, 1>, scalar_prefetch = 0 : i64, scratch_operands = 2 : i64, tpu.core_type = #tpu.core_type<tc>, window_params = [{transform_indices = @transform_0, window_bounds = array<i64: 16, 32>}, {transform_indices = @transform_1, window_bounds = array<i64: 16, 1>}, {transform_indices = @transform_2, window_bounds = array<i64: 1, 1, 1>}, {transform_indices = @transform_3, window_bounds = array<i64: 1, 1, 1>}]} {
    %c0_i32 = arith.constant 0 : i32
    %0 = arith.cmpi eq, %arg1, %c0_i32 : i32
    %1 = arith.extui %0 : i1 to i32
    %c0_i32_0 = arith.constant 0 : i32
    %2 = arith.cmpi ne, %1, %c0_i32_0 : i32
    scf.if %2 {
      %cst_19 = arith.constant 0.000000e+00 : f32
      %37 = vector.broadcast %cst_19 : f32 to vector<16x1xf32>
      %c0_20 = arith.constant 0 : index
      %c0_21 = arith.constant 0 : index
      %38 = vector.load %arg6[%c0_20, %c0_21] : memref<16x1xf32, #tpu.memory_space<vmem>>, vector<16x1xf32>
      tpu.vector_store %arg6[%c0_20, %c0_21], %37 {strides = array<i32>} : memref<16x1xf32, #tpu.memory_space<vmem>>, vector<16x1xf32>,
      %cst_22 = arith.constant 0.000000e+00 : f32
      %39 = vector.broadcast %cst_22 : f32 to vector<16x1xf32>
      %c0_23 = arith.constant 0 : index
      %c0_24 = arith.constant 0 : index
      %40 = vector.load %arg7[%c0_23, %c0_24] : memref<16x1xf32, #tpu.memory_space<vmem>>, vector<16x1xf32>
      tpu.vector_store %arg7[%c0_23, %c0_24], %39 {strides = array<i32>} : memref<16x1xf32, #tpu.memory_space<vmem>>, vector<16x1xf32>,
    } else {
    }
    %c0 = arith.constant 0 : index
    %c0_1 = arith.constant 0 : index
    %3 = vector.load %arg2[%c0, %c0_1] : memref<16x32xf32, #tpu.memory_space<vmem>>, vector<16x32xf32>
    %c0_2 = arith.constant 0 : index
    %c0_3 = arith.constant 0 : index
    %4 = vector.load %arg3[%c0_2, %c0_3] : memref<16x1xi32, #tpu.memory_space<vmem>>, vector<16x1xi32>
    %5 = tpu.iota {dimensions = array<i32: 1>} : vector<16x32xi32>
    %6 = vector.broadcast %4 : vector<16x1xi32> to vector<16x32xi32>
    %7 = arith.cmpi eq, %5, %6 : vector<16x32xi32>
    %cst = arith.constant dense<0xFF800000> : vector<16xf32>
    %8 = vector.multi_reduction <maximumf>, %3, %cst [1] : vector<16x32xf32> to vector<16xf32>
    %9 = vector.shape_cast %8 : vector<16xf32> to vector<16x1xf32>
    %cst_4 = arith.constant 0.000000e+00 : f32
    %10 = vector.broadcast %cst_4 : f32 to vector<16x32xf32>
    %11 = arith.select %7, %3, %10 : vector<16x32xi1>, vector<16x32xf32>
    %cst_5 = arith.constant dense<0.000000e+00> : vector<16xf32>
    %12 = vector.multi_reduction <add>, %11, %cst_5 [1] : vector<16x32xf32> to vector<16xf32>
    %13 = vector.shape_cast %12 : vector<16xf32> to vector<16x1xf32>
    %14 = vector.broadcast %9 : vector<16x1xf32> to vector<16x32xf32>
    %15 = arith.subf %3, %14 : vector<16x32xf32>
    %16 = math.exp %15 : vector<16x32xf32>
    %cst_6 = arith.constant dense<0.000000e+00> : vector<16xf32>
    %17 = vector.multi_reduction <add>, %16, %cst_6 [1] : vector<16x32xf32> to vector<16xf32>
    %18 = vector.shape_cast %17 : vector<16xf32> to vector<16x1xf32>
    %19 = math.log %18 : vector<16x1xf32>
    %20 = arith.subf %9, %13 : vector<16x1xf32>
    %21 = arith.addf %19, %20 : vector<16x1xf32>
    %c0_i32_7 = arith.constant 0 : i32
    %22 = vector.broadcast %c0_i32_7 : i32 to vector<16x1xi32>
    %23 = arith.cmpi ne, %4, %22 : vector<16x1xi32>
    %c0_8 = arith.constant 0 : index
    %c0_9 = arith.constant 0 : index
    %24 = vector.load %arg6[%c0_8, %c0_9] : memref<16x1xf32, #tpu.memory_space<vmem>>, vector<16x1xf32>
    %cst_10 = arith.constant 0.000000e+00 : f32
    %25 = vector.broadcast %cst_10 : f32 to vector<16x1xf32>
    %26 = arith.select %23, %21, %25 : vector<16x1xi1>, vector<16x1xf32>
    %27 = arith.addf %24, %26 : vector<16x1xf32>
    %c0_11 = arith.constant 0 : index
    %c0_12 = arith.constant 0 : index
    %28 = vector.load %arg6[%c0_11, %c0_12] : memref<16x1xf32, #tpu.memory_space<vmem>>, vector<16x1xf32>
    tpu.vector_store %arg6[%c0_11, %c0_12], %27 {strides = array<i32>} : memref<16x1xf32, #tpu.memory_space<vmem>>, vector<16x1xf32>,
    %c0_13 = arith.constant 0 : index
    %c0_14 = arith.constant 0 : index
    %29 = vector.load %arg7[%c0_13, %c0_14] : memref<16x1xf32, #tpu.memory_space<vmem>>, vector<16x1xf32>
    %30 = arith.extui %23 : vector<16x1xi1> to vector<16x1xi32>
    %31 = arith.sitofp %30 : vector<16x1xi32> to vector<16x1xf32>
    %32 = arith.addf %29, %31 : vector<16x1xf32>
    %c0_15 = arith.constant 0 : index
    %c0_16 = arith.constant 0 : index
    %33 = vector.load %arg7[%c0_15, %c0_16] : memref<16x1xf32, #tpu.memory_space<vmem>>, vector<16x1xf32>
    tpu.vector_store %arg7[%c0_15, %c0_16], %32 {strides = array<i32>} : memref<16x1xf32, #tpu.memory_space<vmem>>, vector<16x1xf32>,
    %c0_i32_17 = arith.constant 0 : i32
    %34 = arith.cmpi eq, %arg1, %c0_i32_17 : i32
    %35 = arith.extui %34 : i1 to i32
    %c0_i32_18 = arith.constant 0 : i32
    %36 = arith.cmpi ne, %35, %c0_i32_18 : i32
    scf.if %36 {
      %c0_19 = arith.constant 0 : index
      %c0_20 = arith.constant 0 : index
      %37 = vector.load %arg6[%c0_19, %c0_20] : memref<16x1xf32, #tpu.memory_space<vmem>>, vector<16x1xf32>
      %38 = vector.shape_cast %37 : vector<16x1xf32> to vector<1x16x1xf32>
      %cst_21 = arith.constant dense<0.000000e+00> : vector<1xf32>
      %39 = vector.multi_reduction <add>, %38, %cst_21 [1, 2] : vector<1x16x1xf32> to vector<1xf32>
      %40 = vector.shape_cast %39 : vector<1xf32> to vector<1x1x1xf32>
      %41 = vector.extract %40[0, 0, 0] : f32 from vector<1x1x1xf32>
      %42 = vector.broadcast %41 : f32 to vector<1x1x1xf32>
      %c0_22 = arith.constant 0 : index
      %c0_23 = arith.constant 0 : index
      %c0_24 = arith.constant 0 : index
      %43 = vector.load %arg4[%c0_22, %c0_23, %c0_24] : memref<1x1x1xf32, #tpu.memory_space<vmem>>, vector<1x1x1xf32>
      tpu.vector_store %arg4[%c0_22, %c0_23, %c0_24], %42 {strides = array<i32>} : memref<1x1x1xf32, #tpu.memory_space<vmem>>, vector<1x1x1xf32>,
      %c0_25 = arith.constant 0 : index
      %c0_26 = arith.constant 0 : index
      %44 = vector.load %arg7[%c0_25, %c0_26] : memref<16x1xf32, #tpu.memory_space<vmem>>, vector<16x1xf32>
      %45 = vector.shape_cast %44 : vector<16x1xf32> to vector<1x16x1xf32>
      %cst_27 = arith.constant dense<0.000000e+00> : vector<1xf32>
      %46 = vector.multi_reduction <add>, %45, %cst_27 [1, 2] : vector<1x16x1xf32> to vector<1xf32>
      %47 = vector.shape_cast %46 : vector<1xf32> to vector<1x1x1xf32>
      %48 = vector.extract %47[0, 0, 0] : f32 from vector<1x1x1xf32>
      %49 = vector.broadcast %48 : f32 to vector<1x1x1xf32>
      %c0_28 = arith.constant 0 : index
      %c0_29 = arith.constant 0 : index
      %c0_30 = arith.constant 0 : index
      %50 = vector.load %arg5[%c0_28, %c0_29, %c0_30] : memref<1x1x1xf32, #tpu.memory_space<vmem>>, vector<1x1x1xf32>
      tpu.vector_store %arg5[%c0_28, %c0_29, %c0_30], %49 {strides = array<i32>} : memref<1x1x1xf32, #tpu.memory_space<vmem>>, vector<1x1x1xf32>,
    } else {
    }
    return
  }
  func.func @transform_0(%arg0: i32, %arg1: i32) -> (i32, i32) {
    %c1_i32 = arith.constant 1 : i32
    %0 = arith.muli %arg0, %c1_i32 : i32
    %1 = arith.addi %0, %arg1 : i32
    %c0_i32 = arith.constant 0 : i32
    %2 = arith.minsi %1, %c0_i32 : i32
    %c0_i32_0 = arith.constant 0 : i32
    %c0_i32_1 = arith.constant 0 : i32
    return %2, %c0_i32_0 : i32, i32
  }
  func.func @transform_1(%arg0: i32, %arg1: i32) -> (i32, i32) {
    %c1_i32 = arith.constant 1 : i32
    %0 = arith.muli %arg0, %c1_i32 : i32
    %1 = arith.addi %0, %arg1 : i32
    %c0_i32 = arith.constant 0 : i32
    %c0_i32_0 = arith.constant 0 : i32
    return %1, %c0_i32 : i32, i32
  }
  func.func @transform_2(%arg0: i32, %arg1: i32) -> (i32, i32, i32) {
    %c0_i32 = arith.constant 0 : i32
    %c0_i32_0 = arith.constant 0 : i32
    %c0_i32_1 = arith.constant 0 : i32
    return %arg0, %c0_i32, %c0_i32_0 : i32, i32, i32
  }
  func.func @transform_3(%arg0: i32, %arg1: i32) -> (i32, i32, i32) {
    %c0_i32 = arith.constant 0 : i32
    %c0_i32_0 = arith.constant 0 : i32
    %c0_i32_1 = arith.constant 0 : i32
    return %arg0, %c0_i32, %c0_i32_0 : i32, i32, i32
  }
}

</mosaic_0001>

<bundles_post_ra>
// kernel: tpu_custom_call.1
= control target key start
LH: loop header
LB: loop body
LE: loop exit
PB: predicated region body
PF: predicated region fallthrough
CT: control target
= control target key end

     0   :  { %9 = vsyncpa [#allocation5], 0  ;;  %s426_s0 = inlined_call_operand.hbm [shape: f32[16,32], index: 0, kind: input, shape index: {}]   ;;  %s427_s1 = inlined_call_operand.hbm [shape: s32[16,1], index: 1, kind: input, shape index: {}]   ;;  %s428_s2 = inlined_call_operand.hbm [shape: f32[1,1,1], index: 2, kind: output, shape index: {0}]   ;;  %s429_s3 = inlined_call_operand.hbm [shape: f32[1,1,1], index: 3, kind: output, shape index: {1}]  }
   0x1   :  { %10 = vsyncpa [#allocation8], 0 }
   0x2   :  { %11 = vsyncpa [#allocation6], 0 }
   0x3   :  { %12 = vsyncpa [#allocation11], 0  ;;  %s326_s12 = smov [#allocation4]   ;;  %s230_s16 = scalar_lea.hbm %s426_s0, 256 }
   0x4   :  { %s24_s13 = sshll.u32 %s326_s12, 4  ;;  %p231_p0 = scmp.ne.s32.totalorder %s426_s0, %s230_s16  ;;  %s25_s13 = int_to_ptr.vmem [resolvable:$true] %s24_s13 }
   0x5   :  { %p234_p1 = scmp.lt.u32.totalorder %s230_s16, %s426_s0 }
   0x7   :  { %p236_p2 = pnand %p234_p1, %p231_p0 }
   0x9   :  { %239 = shalt.err (!%p236_p2)
}
   0xa   :  { %s240_s21 = scalar_lea.vmem %s25_s13, 256  ;;  %p245_p4 = scmp.lt.s32.totalorder %s25_s13, %s25_s13 }
   0xb   :  { %p241_p3 = scmp.ne.s32.totalorder %s25_s13, %s240_s21  ;;  %p246_p5 = scmp.lt.s32.totalorder %s240_s21, %s240_s21 }
   0xd   :  { %p247_p6 = por %p246_p5, %p245_p4 }
   0xf   :  { %p248_p7 = pnand %p247_p6, %p241_p3 }
  0x11   :  { %251 = shalt.err (!%p248_p7)
}
  0x12   :  { %s327_s22 = smov 128   ;;  %s328_s23 = smov 8  }
  0x13   :  { %30 = dma.hbm_to_vmem [thread:$0]  %s426_s0, 256, %s25_s13, [#allocation5], %s327_s22, %s327_s22, %s328_s23  }
  0x14   :  { %s329_s26 = smov [#allocation7]   ;;  %s252_s30 = scalar_lea.hbm %s427_s1, 256 }
  0x15   :  { %s40_s27 = sshll.u32 %s329_s26, 4  ;;  %p253_p8 = scmp.ne.s32.totalorder %s427_s1, %s252_s30  ;;  %s41_s27 = int_to_ptr.vmem [resolvable:$true] %s40_s27 }
  0x16   :  { %p256_p9 = scmp.lt.u32.totalorder %s252_s30, %s427_s1 }
  0x18   :  { %p258_p10 = pnand %p256_p9, %p253_p8 }
  0x1a   :  { %261 = shalt.err (!%p258_p10)
}
  0x1b   :  { %s262_s8 = scalar_lea.vmem %s41_s27, 256  ;;  %p267_p12 = scmp.lt.s32.totalorder %s41_s27, %s41_s27 }
  0x1c   :  { %p263_p11 = scmp.ne.s32.totalorder %s41_s27, %s262_s8  ;;  %p268_p13 = scmp.lt.s32.totalorder %s262_s8, %s262_s8 }
  0x1e   :  { %p269_p0 = por %p268_p13, %p267_p12 }
  0x20   :  { %p270_p1 = pnand %p269_p0, %p263_p11 }
  0x22   :  { %273 = shalt.err (!%p270_p1)
}
  0x23   :  { %46 = dma.hbm_to_vmem [thread:$0]  %s427_s1, 256, %s41_s27, [#allocation8], %s327_s22, %s327_s22, %s328_s23  }
  0x24   :  { %318 = dma.done.wait [#allocation5], 256  }
  0x25   :  { %319 = vsyncadd [#allocation5], 4294967040 }
  0x26   :  { %320 = dma.done.wait [#allocation8], 256  }
  0x27   :  { %321 = vsyncadd [#allocation8], 4294967040  ;;  %vm63_vm0 = vcmask 7168   ;;  %v330_v0 = vmov 0   ;;  %v331_v1 = vmov 0.0   ;;  %vm82_vm1 = vcmask 261120  }
  0x28   :  { %220 = vset.pattern.permute.xlu1 %v330_v0  ;;  %66 = vst.msk [vmem:[#allocation3] sm:$0xff] %vm63_vm0, %v331_v1  ;;  %64 = vst.msk [vmem:[#allocation2] sm:$0xff] %vm63_vm0, %v331_v1  ;;  %221 = vset.pattern.permute.xlu0 %v330_v0  ;;  %v68_v2 = vld [vmem:[#allocation4] sm:$0xff]  ;;  %v69_v3 = vld [vmem:[#allocation4 + $0x8] sm:$0xff]  ;;  %v72_v18 = vlaneseq  ;;  %s332_s1 = smov [#allocation9]   ;;  %vm156_vm6 = vcmask 0  }
  0x29   :  { %65 = vst.msk [vmem:[#allocation2 + $0x8] sm:$0xff] %vm63_vm0, %v331_v1  ;;  %67 = vst.msk [vmem:[#allocation3 + $0x8] sm:$0xff] %vm63_vm0, %v331_v1  ;;  %v70_v4 = vld [vmem:[#allocation7] sm:$0xff]  ;;  %v83_v5 = vsel %vm82_vm1, %v68_v2, -inf  ;;  %v71_v7 = vld [vmem:[#allocation7 + $0x8] sm:$0xff]  ;;  %v86_v10 = vsel %vm82_vm1, %v69_v3, -inf }
  0x2a   :  { %75 = vperm.xlu1 %220, %v70_v4   ;;  %vm117_vm2 = vcmp.ne.s32.totalorder %v70_v4, 0  ;;  %84 = vmax.xlane.f32.xlu0 %v83_v5  ;;  %vm118_vm3 = vcmp.ne.s32.totalorder %v71_v7, 0  ;;  %v73_v22 = vand.u32 127, %v72_v18  ;;  %s180_s10 = sshll.u32 %s332_s1, 4  ;;  %s333_s12 = smov [#allocation10]   ;;  %s181_s10 = int_to_ptr.vmem [resolvable:$true] %s180_s10 }
  0x2b   :  { %v206_v9 = vsel %vm117_vm2, 1.0, %v331_v1  ;;  %v207_v12 = vsel %vm118_vm3, 1.0, %v331_v1  ;;  %s190_s13 = sshll.u32 %s333_s12, 4  ;;  %s274_s14 = scalar_lea.vmem %s181_s10, 16  ;;  %s191_s13 = int_to_ptr.vmem [resolvable:$true] %s190_s13 }
  0x2c   :  { %p275_p2 = scmp.ne.s32.totalorder %s181_s10, %s274_s14  ;;  %s278_s15 = scalar_lea.vmem %s181_s10, 32 }
  0x2d   :  { %p279_p3 = scmp.lt.s32.totalorder %s181_s10, %s181_s10  ;;  %p280_p4 = scmp.lt.s32.totalorder %s278_s15, %s274_s14 }
  0x2e   :  { %78 = vperm.xlu1 %220, %v71_v7   ;;  %87 = vmax.xlane.f32.xlu0 %v86_v10 }
  0x2f   :  { %v128_v6 = vld [vmem:[#allocation3] sm:$0xff]  ;;  %v119_v40 = vld [vmem:[#allocation2] sm:$0xff]  ;;  %p281_p5 = por %p280_p4, %p279_p3 }
  0x30   :  { %v129_v8 = vld [vmem:[#allocation3 + $0x8] sm:$0xff]  ;;  %v134_v11 = vadd.f32 %v206_v9, %v128_v6  ;;  %v120_v47 = vld [vmem:[#allocation2 + $0x8] sm:$0xff] }
  0x31   :  { %v135_v13 = vadd.f32 %v207_v12, %v129_v8  ;;  %p282_p6 = pnand %p281_p5, %p275_p2 }
  0x32   :  { %136 = vst.msk [vmem:[#allocation3] sm:$0xff] %vm63_vm0, %v134_v11 }
  0x33   :  { %137 = vst.msk [vmem:[#allocation3 + $0x8] sm:$0xff] %vm63_vm0, %v135_v13 }
  0x39   :  { %v158_v51 = vld [vmem:[#allocation3] sm:$0xff] }
  0x3a   :  { %v159_v52 = vld [vmem:[#allocation3 + $0x8] sm:$0xff]  ;;  %v160_v56 = vsel %vm63_vm0, %v158_v51, 0.0 }
  0x3b   :  { %v161_v57 = vsel %vm63_vm0, %v159_v52, 0.0 }
  0x3c   :  { %v162_v59 = vadd.f32 %v161_v57, %v160_v56 }
  0xa9   :  { %v76_v21 = vpop.permute.xlu1 %75 }
  0xaa   :  { %vm80_vm4 = vcmp.eq.s32.totalorder %v73_v22, %v76_v21 }
  0xab   :  { %v89_v25 = vsel %vm80_vm4, %v68_v2, 0.0 }
  0xac   :  { %v91_v27 = vsel %vm82_vm1, %v89_v25, 0.0 }
  0xad   :  { %v79_v23 = vpop.permute.xlu1 %78 }
  0xae   :  { %vm81_vm5 = vcmp.eq.s32.totalorder %v73_v22, %v79_v23 }
  0xaf   :  { %v90_v29 = vsel %vm81_vm5, %v69_v3, 0.0 }
  0xb0   :  { %v94_v31 = vsel %vm82_vm1, %v90_v29, 0.0 }
  0xb7   :  { %v85_v14 = vpop.xlane.xlu0 %84 }
  0xb8   :  { %v97_v15 = vsub.f32 %v68_v2, %v85_v14 }
  0xba   :  { %v99_v16 = vmul.f32 1.442695, %v97_v15 }
  0xbb   :  { %v88_v17 = vpop.xlane.xlu0 %87 }
  0xbc   :  { %222 = vpow2.f32 %v99_v16  ;;  %v98_v19 = vsub.f32 %v69_v3, %v88_v17 }
  0xbe   :  { %v101_v20 = vmul.f32 1.442695, %v98_v19 }
  0xc0   :  { %224 = vpow2.f32 %v101_v20 }
  0xc6   :  { %v223_v24 = vpop.eup %222 }
  0xc7   :  { %v103_v26 = vsel %vm82_vm1, %v223_v24, 0.0 }
  0xc8   :  { %104 = vadd.xlane.f32.xlu0 %v103_v26 }
  0xca   :  { %v225_v28 = vpop.eup %224 }
  0xcb   :  { %v106_v30 = vsel %vm82_vm1, %v225_v28, 0.0 }
  0xcc   :  { %92 = vadd.xlane.f32.xlu0 %v91_v27  ;;  %107 = vadd.xlane.f32.xlu1 %v106_v30 }
  0xd0   :  { %95 = vadd.xlane.f32.xlu0 %v94_v31 }
 0x155   :  { %v105_v32 = vpop.xlane.xlu0 %104 }
 0x156   :  { %226 = vlog2.f32 %v105_v32 }
 0x159   :  { %v108_v33 = vpop.xlane.xlu1 %107  ;;  %v93_v34 = vpop.xlane.xlu0 %92 }
 0x15a   :  { %228 = vlog2.f32 %v108_v33  ;;  %v113_v37 = vsub.f32 %v85_v14, %v93_v34 }
 0x15d   :  { %v96_v38 = vpop.xlane.xlu0 %95 }
 0x15e   :  { %v114_v44 = vsub.f32 %v88_v17, %v96_v38 }
 0x160   :  { %v227_v35 = vpop.eup %226 }
 0x161   :  { %v110_v36 = vmul.f32 0.6931472, %v227_v35 }
 0x163   :  { %v115_v39 = vadd.f32 %v113_v37, %v110_v36 }
 0x164   :  { %v229_v41 = vpop.eup %228 }
 0x165   :  { %v112_v42 = vmul.f32 0.6931472, %v229_v41  ;;  %v121_v43 = vsel %vm117_vm2, %v115_v39, 0.0 }
 0x166   :  { %v123_v45 = vadd.f32 %v121_v43, %v119_v40 }
 0x167   :  { %v116_v46 = vadd.f32 %v114_v44, %v112_v42 }
 0x168   :  { %126 = vst.msk [vmem:[#allocation2] sm:$0xff] %vm63_vm0, %v123_v45 }
 0x169   :  { %v122_v48 = vsel %vm118_vm3, %v116_v46, 0.0 }
 0x16a   :  { %v124_v49 = vadd.f32 %v122_v48, %v120_v47 }
 0x16c   :  { %127 = vst.msk [vmem:[#allocation2 + $0x8] sm:$0xff] %vm63_vm0, %v124_v49 }
 0x16f   :  { %v141_v50 = vld [vmem:[#allocation2] sm:$0xff] }
 0x170   :  { %v143_v54 = vsel %vm63_vm0, %v141_v50, 0.0 }
 0x173   :  { %v142_v53 = vld [vmem:[#allocation2 + $0x8] sm:$0xff] }
 0x174   :  { %v144_v55 = vsel %vm63_vm0, %v142_v53, 0.0 }
 0x175   :  { %v145_v58 = vadd.f32 %v144_v55, %v143_v54 }
 0x177   :  { %146 = vadd.xlane.f32.xlu0 %v145_v58 }
 0x17b   :  { %163 = vadd.xlane.f32.xlu0 %v162_v59 }
 0x204   :  { %v147_v60 = vpop.xlane.xlu0 %146 }
 0x205   :  { %v148_v61 = vrot.slane %v147_v60, 4 }
 0x207   :  { %v149_v62 = vadd.f32 %v148_v61, %v147_v60 }
 0x208   :  { %v164_v63 = vpop.xlane.xlu0 %163 }
 0x209   :  { %v150_v0 = vrot.slane %v149_v62, 2  ;;  %v165_v1 = vrot.slane %v164_v63, 4 }
 0x20b   :  { %v166_v2 = vadd.f32 %v165_v1, %v164_v63  ;;  %v151_v3 = vadd.f32 %v150_v0, %v149_v62 }
 0x20d   :  { %v167_v4 = vrot.slane %v166_v2, 2  ;;  %v152_v5 = vrot.slane %v151_v3, 1 }
 0x20f   :  { %v168_v6 = vadd.f32 %v167_v4, %v166_v2  ;;  %v153_v7 = vadd.f32 %v152_v5, %v151_v3 }
 0x211   :  { %208 = vpush %v153_v7  ;;  %v169_v8 = vrot.slane %v168_v6, 1 }
 0x213   :  { %v170_v9 = vadd.f32 %v169_v8, %v168_v6 }
 0x215   :  { %210 = vpush %v170_v9 }
 0x242   :  { %s209_s11 = spop %208 }
 0x243   :  { %v155_v10 = vstv %s209_s11 }
 0x244   :  { %157 = vst.msk [vmem:[#allocation9] sm:$0x1] %vm156_vm6, %v155_v10 }
 0x245   :  { %285 = shalt.err (!%p282_p6)
}
 0x246   :  { %s286_s18 = scalar_lea.hbm %s428_s2, 16 }
 0x247   :  { %p287_p7 = scmp.ne.s32.totalorder %s428_s2, %s286_s18  ;;  %p290_p8 = scmp.lt.u32.totalorder %s286_s18, %s428_s2 }
 0x249   :  { %p292_p9 = pnand %p290_p8, %p287_p7 }
 0x24b   :  { %295 = shalt.err (!%p292_p9)
}
 0x24c   :  { %183 = dma.vmem_to_hbm [thread:$0]  %s181_s10, 16, %s428_s2, [#allocation6]  }
 0x24d   :  { %s211_s25 = spop %210  ;;  %s296_s26 = scalar_lea.vmem %s191_s13, 16 }
 0x24e   :  { %v172_v11 = vstv %s211_s25  ;;  %p297_p10 = scmp.ne.s32.totalorder %s191_s13, %s296_s26  ;;  %s300_s27 = scalar_lea.vmem %s191_s13, 32 }
 0x24f   :  { %173 = vst.msk [vmem:[#allocation10] sm:$0x1] %vm156_vm6, %v172_v11  ;;  %p301_p11 = scmp.lt.s32.totalorder %s191_s13, %s191_s13  ;;  %p302_p12 = scmp.lt.s32.totalorder %s300_s27, %s296_s26 }
 0x251   :  { %p303_p13 = por %p302_p12, %p301_p11 }
 0x253   :  { %p304_p0 = pnand %p303_p13, %p297_p10 }
 0x255   :  { %307 = shalt.err (!%p304_p0)
}
 0x256   :  { %s308_s30 = scalar_lea.hbm %s429_s3, 16 }
 0x257   :  { %p309_p1 = scmp.ne.s32.totalorder %s429_s3, %s308_s30  ;;  %p312_p2 = scmp.lt.u32.totalorder %s308_s30, %s429_s3 }
 0x259   :  { %p314_p3 = pnand %p312_p2, %p309_p1 }
 0x25b   :  { %317 = shalt.err (!%p314_p3)
}
 0x25c   :  { %193 = dma.vmem_to_hbm [thread:$0]  %s191_s13, 16, %s429_s3, [#allocation11]  }
 0x25d   :  { %322 = dma.done.wait [#allocation6], 16  }
 0x25e   :  { %323 = vsyncadd [#allocation6], 4294967280 }
 0x25f   :  { %324 = dma.done.wait [#allocation11], 16  }
 0x260   :  { %325 = vsyncadd [#allocation11], 4294967280 }
 0x261   :  { %200 = vsyncpa [#allocation5], 1 }
 0x262   :  { %201 = vsyncpa [#allocation8], 1 }
 0x263   :  { %202 = vsyncpa [#allocation6], 1 }
 0x264   :  { %203 = vsyncpa [#allocation11], 1 }

</bundles_post_ra>
